<compile_context>
chip_gen: v7x
topology: tpu7x:2x2x1
jax: 0.10.0
libtpu: 0.0.40
codegen_flags: <defaults>
</compile_context>

<pallas_src>
import functools

import jax
import jax.numpy as jnp
from jax import lax
from jax.experimental import pallas as pl
from jax.experimental.pallas import tpu as pltpu

_EPS = 1e-5  # torch default for both InstanceNorm2d and BatchNorm2d


def _ibn_kernel(x_ref, p_ref, o_ref, *, inv_n, eps, num_ch, half1, tile_rows):
    """Rows are (n, c) pairs of NCHW flattened to (N*C, H*W).

    IN rows (c <  half1): y = relu((x - mean_row) * rsqrt(var_row + eps) * g + b)
    BN rows (c >= half1): y = relu(x * s_pre + t_pre)   (batch-stat affine, precomputed)
    p_ref[:, 0:2] holds (g, b) for IN rows and (s_pre, t_pre) for BN rows.
    """
    x = x_ref[...].astype(jnp.float32)                          # (TR, L)

    # Single pass for both moments -> no centered full-block temporary kept live.
    row_sum = jnp.sum(x, axis=1, keepdims=True)                 # (TR, 1)
    row_sumsq = jnp.sum(x * x, axis=1, keepdims=True)           # (TR, 1)
    mean = row_sum * inv_n
    var = jnp.maximum(row_sumsq * inv_n - mean * mean, 0.0)     # biased variance

    row0 = pl.program_id(0) * tile_rows
    rid = row0 + lax.broadcasted_iota(jnp.int32, (tile_rows, 1), 0)
    is_in = (rid % num_ch) < half1                              # (TR, 1)

    g = p_ref[:, 0:1].astype(jnp.float32)                       # (TR, 1)
    b = p_ref[:, 1:2].astype(jnp.float32)
    inv_std = jnp.where(is_in, lax.rsqrt(var + eps), 1.0)
    mu = jnp.where(is_in, mean, 0.0)
    s = inv_std * g
    t = b - mu * s

    y = x * s + t
    o_ref[...] = jnp.maximum(y, 0.0).astype(o_ref.dtype)


def _round_up(v, m):
    return ((v + m - 1) // m) * m


def _vmem_limit_and_budget():
    """Generation-aware scoped-VMEM limit and tile budget (bytes)."""
    cap = 64 << 20  # conservative fallback (v7x physical VMEM per TC)
    try:
        info = pltpu.get_tpu_info()
        cap = int(getattr(info, "vmem_capacity_bytes", cap))
    except Exception:
        pass
    # v5e/v6e (128 MiB) -> 64 MiB scoped limit, 48 MiB tile budget
    # v7x    ( 64 MiB) -> 32 MiB scoped limit, 24 MiB tile budget
    limit = min(cap // 2, 64 << 20)
    return limit, (limit * 3) // 4


def _pick_tile_rows(rows, cols, itemsize, budget_bytes, row_align):
    """Largest aligned row tile fitting the budget, with >=2 grid blocks when possible."""
    # Per element: input block x2 (double buffered) + output block x2 + f32 working
    # copy + one f32 temporary (x*x / y).
    per_row = cols * (4 * itemsize + 8)
    max_rows = max(row_align, (budget_bytes // max(per_row, 1)) // row_align * row_align)
    # Cap so that >=2 grid blocks exist (both v7x TensorCores busy) when rows allow.
    two_block = _round_up(pl.cdiv(rows, 2), row_align)
    tile = min(max_rows, two_block)
    if tile >= rows:
        return rows            # single block == full dim (always layout-legal)
    return tile                # multiple of row_align, < rows


def ibn_forward(x, in_gamma, in_beta, bn_gamma, bn_beta, *, eps=_EPS):
    """IBN forward. x: (N, C, H, W). Returns (N, C, H, W)."""
    N, C, H, W = x.shape
    half1 = C // 2
    HW = H * W
    rows = N * C
    itemsize = x.dtype.itemsize

    # ---- BatchNorm train-mode batch statistics via a tiny XLA reduce ----------
    # (fuses with the channel slice; no transpose / (half2, N*H*W) reshape).
    xb = x[:, half1:].astype(jnp.float32)
    mean_b = jnp.mean(xb, axis=(0, 2, 3))
    var_b = jnp.maximum(jnp.mean(jnp.square(xb), axis=(0, 2, 3)) - jnp.square(mean_b), 0.0)
    bn_scale = bn_gamma.astype(jnp.float32) * lax.rsqrt(var_b + eps)
    bn_shift = bn_beta.astype(jnp.float32) - mean_b * bn_scale

    # ---- Per-row (scale/gamma, shift/beta) table: (N*C, 2), row = n*C + c ------
    s_ch = jnp.concatenate([in_gamma.astype(jnp.float32), bn_scale])
    t_ch = jnp.concatenate([in_beta.astype(jnp.float32), bn_shift])
    params = jnp.stack([s_ch, t_ch], axis=-1)                       # (C, 2)
    params = jnp.broadcast_to(params[None], (N, C, 2)).reshape(rows, 2)

    # ---- Fused normalize + affine + ReLU over the natural (N*C, H*W) slab ------
    x2d = x.reshape(rows, HW)                                        # free reshape

    vmem_limit, budget = _vmem_limit_and_budget()
    row_align = 8 * max(1, 4 // itemsize)                            # 8 f32 / 16 bf16 / 32 int8
    tile_rows = _pick_tile_rows(rows, HW, itemsize, budget, row_align)
    grid = (pl.cdiv(rows, tile_rows),)

    kernel = functools.partial(
        _ibn_kernel,
        inv_n=1.0 / HW,
        eps=float(eps),
        num_ch=C,
        half1=half1,
        tile_rows=tile_rows,
    )

    cost = pl.CostEstimate(
        flops=8 * rows * HW,
        transcendentals=rows,
        bytes_accessed=2 * rows * HW * itemsize + rows * 2 * 4,
    )

    y2d = pl.pallas_call(
        kernel,
        out_shape=jax.ShapeDtypeStruct((rows, HW), x.dtype),
        grid_spec=pl.GridSpec(
            grid=grid,
            in_specs=[
                pl.BlockSpec((tile_rows, HW), lambda i: (i, 0)),
                pl.BlockSpec((tile_rows, 2), lambda i: (i, 0)),
            ],
            out_specs=pl.BlockSpec((tile_rows, HW), lambda i: (i, 0)),
        ),
        compiler_params=pltpu.CompilerParams(
            dimension_semantics=("parallel",),
            vmem_limit_bytes=int(vmem_limit),
        ),
        cost_estimate=cost,
    )(x2d, params)

    return y2d.reshape(N, C, H, W)                                   # free reshape


def _reference_ibn(x, in_gamma, in_beta, bn_gamma, bn_beta, *, eps=_EPS):
    N, C, H, W = x.shape
    half1 = C // 2
    x_in = x[:, :half1]
    mu = x_in.mean(axis=(2, 3), keepdims=True)
    var = x_in.var(axis=(2, 3), keepdims=True)                       # biased
    y_in = (x_in - mu) / jnp.sqrt(var + eps)
    y_in = y_in * in_gamma.reshape(1, -1, 1, 1) + in_beta.reshape(1, -1, 1, 1)
    y_in = jnp.maximum(y_in, 0.0)

    x_bn = x[:, half1:]
    mu_b = x_bn.mean(axis=(0, 2, 3), keepdims=True)
    var_b = x_bn.var(axis=(0, 2, 3), keepdims=True)                  # biased
    y_bn = (x_bn - mu_b) / jnp.sqrt(var_b + eps)
    y_bn = y_bn * bn_gamma.reshape(1, -1, 1, 1) + bn_beta.reshape(1, -1, 1, 1)
    y_bn = jnp.maximum(y_bn, 0.0)

    return jnp.concatenate([y_in, y_bn], axis=1)


if __name__ == "__main__":
    key = jax.random.PRNGKey(0)
    N, C, H, W = 2, 4, 16, 16
    half1 = C // 2
    half2 = C - half1

    kx, kg1, kb1, kg2, kb2 = jax.random.split(key, 5)
    x = jax.random.normal(kx, (N, C, H, W), dtype=jnp.float32) * 2.0 + 0.5

    # Freshly-constructed torch modules use gamma=1, beta=0; perturb slightly to
    # exercise the affine path (reference implements the same formula).
    in_gamma = 1.0 + 0.1 * jax.random.normal(kg1, (half1,), jnp.float32)
    in_beta = 0.1 * jax.random.normal(kb1, (half1,), jnp.float32)
    bn_gamma = 1.0 + 0.1 * jax.random.normal(kg2, (half2,), jnp.float32)
    bn_beta = 0.1 * jax.random.normal(kb2, (half2,), jnp.float32)

    out = jax.block_until_ready(ibn_forward(x, in_gamma, in_beta, bn_gamma, bn_beta))
    ref = jax.block_until_ready(_reference_ibn(x, in_gamma, in_beta, bn_gamma, bn_beta))

    assert out.shape == (N, C, H, W), out.shape
    assert jnp.allclose(out, ref, atol=1e-4, rtol=1e-4), float(jnp.max(jnp.abs(out - ref)))
    print("KERNEL_OK")
</pallas_src>

<mosaic_0001>
module attributes {stable_mosaic.version = 11 : i64} {
  func.func @_ibn_kernel(%arg0: i32, %arg1: memref<8x256xf32, #tpu.memory_space<vmem>>, %arg2: memref<8x2xf32, #tpu.memory_space<vmem>>, %arg3: memref<8x256xf32, #tpu.memory_space<vmem>>) attributes {dimension_semantics = [#tpu.dimension_semantics<parallel>], iteration_bounds = array<i64: 1>, scalar_prefetch = 0 : i64, scratch_operands = 0 : i64, tpu.core_type = #tpu.core_type<tc>, window_params = [{transform_indices = @transform_0, window_bounds = array<i64: 8, 256>}, {transform_indices = @transform_1, window_bounds = array<i64: 8, 2>}, {transform_indices = @transform_2, window_bounds = array<i64: 8, 256>}]} {
    %c0 = arith.constant 0 : index
    %c0_0 = arith.constant 0 : index
    %0 = vector.load %arg1[%c0, %c0_0] : memref<8x256xf32, #tpu.memory_space<vmem>>, vector<8x256xf32>
    %cst = arith.constant dense<0.000000e+00> : vector<8xf32>
    %1 = vector.multi_reduction <add>, %0, %cst [1] : vector<8x256xf32> to vector<8xf32>
    %2 = vector.shape_cast %1 : vector<8xf32> to vector<8x1xf32>
    %3 = arith.mulf %0, %0 : vector<8x256xf32>
    %cst_1 = arith.constant dense<0.000000e+00> : vector<8xf32>
    %4 = vector.multi_reduction <add>, %3, %cst_1 [1] : vector<8x256xf32> to vector<8xf32>
    %5 = vector.shape_cast %4 : vector<8xf32> to vector<8x1xf32>
    %cst_2 = arith.constant 3.906250e-03 : f32
    %6 = vector.broadcast %cst_2 : f32 to vector<8x1xf32>
    %7 = arith.mulf %2, %6 : vector<8x1xf32>
    %cst_3 = arith.constant 3.906250e-03 : f32
    %8 = vector.broadcast %cst_3 : f32 to vector<8x1xf32>
    %9 = arith.mulf %5, %8 : vector<8x1xf32>
    %10 = arith.mulf %7, %7 : vector<8x1xf32>
    %11 = arith.subf %9, %10 : vector<8x1xf32>
    %cst_4 = arith.constant 0.000000e+00 : f32
    %12 = vector.broadcast %cst_4 : f32 to vector<8x1xf32>
    %13 = arith.maximumf %11, %12 : vector<8x1xf32>
    %c8_i32 = arith.constant 8 : i32
    %14 = arith.muli %arg0, %c8_i32 : i32
    %15 = tpu.iota {dimensions = array<i32: 0>} : vector<8x1xi32>
    %16 = vector.broadcast %14 : i32 to vector<8x1xi32>
    %17 = arith.addi %16, %15 : vector<8x1xi32>
    %c4_i32 = arith.constant 4 : i32
    %c0_i32 = arith.constant 0 : i32
    %18 = arith.cmpi eq, %c4_i32, %c0_i32 : i32
    %c1_i32 = arith.constant 1 : i32
    %19 = arith.select %18, %c1_i32, %c4_i32 : i32
    %20 = vector.broadcast %19 : i32 to vector<8x1xi32>
    %21 = arith.remsi %17, %20 : vector<8x1xi32>
    %c0_i32_5 = arith.constant 0 : i32
    %22 = vector.broadcast %c0_i32_5 : i32 to vector<8x1xi32>
    %23 = arith.cmpi ne, %21, %22 : vector<8x1xi32>
    %c0_i32_6 = arith.constant 0 : i32
    %24 = vector.broadcast %c0_i32_6 : i32 to vector<8x1xi32>
    %25 = arith.cmpi slt, %21, %24 : vector<8x1xi32>
    %c0_i32_7 = arith.constant 0 : i32
    %26 = arith.cmpi slt, %19, %c0_i32_7 : i32
    %27 = vector.broadcast %26 : i1 to vector<8x1xi1>
    %28 = vector.broadcast %27 : vector<8x1xi1> to vector<8x1xi1>
    %29 = arith.xori %25, %28 : vector<8x1xi1>
    %30 = arith.andi %29, %23 : vector<8x1xi1>
    %31 = vector.broadcast %19 : i32 to vector<8x1xi32>
    %32 = arith.addi %21, %31 : vector<8x1xi32>
    %33 = arith.select %30, %32, %21 : vector<8x1xi1>, vector<8x1xi32>
    %c2_i32 = arith.constant 2 : i32
    %34 = vector.broadcast %c2_i32 : i32 to vector<8x1xi32>
    %35 = arith.cmpi slt, %33, %34 : vector<8x1xi32>
    %c0_8 = arith.constant 0 : index
    %c0_9 = arith.constant 0 : index
    %36 = vector.load %arg2[%c0_8, %c0_9] : memref<8x2xf32, #tpu.memory_space<vmem>>, vector<8x1xf32>
    %c0_10 = arith.constant 0 : index
    %c1 = arith.constant 1 : index
    %37 = vector.load %arg2[%c0_10, %c1] : memref<8x2xf32, #tpu.memory_space<vmem>>, vector<8x1xf32>
    %cst_11 = arith.constant 9.99999974E-6 : f32
    %38 = vector.broadcast %cst_11 : f32 to vector<8x1xf32>
    %39 = arith.addf %13, %38 : vector<8x1xf32>
    %40 = math.rsqrt %39 : vector<8x1xf32>
    %cst_12 = arith.constant 1.000000e+00 : f32
    %41 = vector.broadcast %cst_12 : f32 to vector<8x1xf32>
    %42 = arith.select %35, %40, %41 : vector<8x1xi1>, vector<8x1xf32>
    %cst_13 = arith.constant 0.000000e+00 : f32
    %43 = vector.broadcast %cst_13 : f32 to vector<8x1xf32>
    %44 = arith.select %35, %7, %43 : vector<8x1xi1>, vector<8x1xf32>
    %45 = arith.mulf %42, %36 : vector<8x1xf32>
    %46 = arith.mulf %44, %45 : vector<8x1xf32>
    %47 = arith.subf %37, %46 : vector<8x1xf32>
    %48 = vector.broadcast %45 : vector<8x1xf32> to vector<8x256xf32>
    %49 = arith.mulf %0, %48 : vector<8x256xf32>
    %50 = vector.broadcast %47 : vector<8x1xf32> to vector<8x256xf32>
    %51 = arith.addf %49, %50 : vector<8x256xf32>
    %cst_14 = arith.constant 0.000000e+00 : f32
    %52 = vector.broadcast %cst_14 : f32 to vector<8x256xf32>
    %53 = arith.maximumf %51, %52 : vector<8x256xf32>
    %c0_15 = arith.constant 0 : index
    %c0_16 = arith.constant 0 : index
    %54 = vector.load %arg3[%c0_15, %c0_16] : memref<8x256xf32, #tpu.memory_space<vmem>>, vector<8x256xf32>
    tpu.vector_store %arg3[%c0_15, %c0_16], %53 {strides = array<i32>} : memref<8x256xf32, #tpu.memory_space<vmem>>, vector<8x256xf32>,
    return
  }
  func.func @transform_0(%arg0: i32) -> (i32, i32) {
    %c0_i32 = arith.constant 0 : i32
    %c0_i32_0 = arith.constant 0 : i32
    return %arg0, %c0_i32 : i32, i32
  }
  func.func @transform_1(%arg0: i32) -> (i32, i32) {
    %c0_i32 = arith.constant 0 : i32
    %c0_i32_0 = arith.constant 0 : i32
    return %arg0, %c0_i32 : i32, i32
  }
  func.func @transform_2(%arg0: i32) -> (i32, i32) {
    %c0_i32 = arith.constant 0 : i32
    %c0_i32_0 = arith.constant 0 : i32
    return %arg0, %c0_i32 : i32, i32
  }
}

</mosaic_0001>

<bundles_post_ra>
// kernel: tpu_custom_call.1
= control target key start
LH: loop header
LB: loop body
LE: loop exit
PB: predicated region body
PF: predicated region fallthrough
CT: control target
= control target key end

     0   :  { %7 = vsyncpa [#allocation3], 0  ;;  %s206_s0 = inlined_call_operand.hbm [shape: f32[8,256], index: 0, kind: input, shape index: {}]   ;;  %s207_s1 = inlined_call_operand.vmem [shape: f32[8,2], index: 1, kind: input, shape index: {}]   ;;  %s208_s2 = inlined_call_operand.hbm [shape: f32[8,256], index: 2, kind: output, shape index: {}]  }
   0x1   :  { %8 = vsyncpa [#allocation4], 0  ;;  %s159_s9 = smov [#allocation2]   ;;  %s111_s13 = scalar_lea.hbm %s206_s0, 256 }
   0x2   :  { %s15_s10 = sshll.u32 %s159_s9, 4  ;;  %p112_p0 = scmp.ne.s32.totalorder %s206_s0, %s111_s13  ;;  %s16_s10 = int_to_ptr.vmem [resolvable:$true] %s15_s10 }
   0x3   :  { %p115_p1 = scmp.lt.u32.totalorder %s111_s13, %s206_s0 }
   0x5   :  { %p117_p2 = pnand %p115_p1, %p112_p0 }
   0x7   :  { %120 = shalt.err (!%p117_p2)
}
   0x8   :  { %s121_s18 = scalar_lea.vmem %s16_s10, 256  ;;  %p126_p4 = scmp.lt.s32.totalorder %s16_s10, %s16_s10 }
   0x9   :  { %p122_p3 = scmp.ne.s32.totalorder %s16_s10, %s121_s18  ;;  %p127_p5 = scmp.lt.s32.totalorder %s121_s18, %s121_s18 }
   0xb   :  { %p128_p6 = por %p127_p5, %p126_p4 }
   0xd   :  { %p129_p7 = pnand %p128_p6, %p122_p3 }
   0xf   :  { %132 = shalt.err (!%p129_p7)
}
  0x10   :  { %18 = dma.hbm_to_vmem [thread:$0]  %s206_s0, 256, %s16_s10, [#allocation3]  }
  0x11   :  { %155 = dma.done.wait [#allocation3], 256  }
  0x12   :  { %156 = vsyncadd [#allocation3], 4294967040  ;;  %v24_v0 = vld [vmem:[#allocation2] sm:$0xff]  ;;  %v25_v1 = vld [vmem:[#allocation2 + $0x8] sm:$0xff]  ;;  %v160_v6 = vmov 0   ;;  %v40_v15 = vlaneseq  ;;  %v161_v17 = vmov 1  }
  0x13   :  { %v26_v2 = vadd.f32 %v25_v1, %v24_v0  ;;  %v29_v3 = vmul.f32 %v24_v0, %v24_v0  ;;  %v30_v4 = vmul.f32 %v25_v1, %v25_v1  ;;  %107 = vset.pattern.permute.xlu1 %v160_v6  ;;  %108 = vset.pattern.permute.xlu0 %v161_v17  ;;  %v57_v19 = vld [vmem:[%s207_s1] sm:$0xff]  ;;  %s162_s22 = smov 1   ;;  %s163_s23 = smov [#allocation5]  }
  0x14   :  { %v41_v16 = vshrl.u32 %v40_v15, 7  ;;  %s93_s24 = sshll.u32 %s163_s23, 4  ;;  %s94_s24 = int_to_ptr.vmem [resolvable:$true] %s93_s24 }
  0x15   :  { %27 = vadd.xlane.f32.xlu0 %v26_v2  ;;  %v31_v5 = vadd.f32 %v30_v4, %v29_v3  ;;  %s133_s1 = scalar_lea.vmem %s94_s24, 256  ;;  %p138_p9 = scmp.lt.s32.totalorder %s94_s24, %s94_s24 }
  0x16   :  { %v48_v18 = vand.u32 3, %v41_v16  ;;  %p134_p8 = scmp.ne.s32.totalorder %s94_s24, %s133_s1  ;;  %p139_p10 = scmp.lt.s32.totalorder %s133_s1, %s133_s1 }
  0x18   :  { %vm56_vm0 = vcmp.lt.s32.totalorder %v48_v18, 2  ;;  %p140_p11 = por %p139_p10, %p138_p9 }
  0x19   :  { %32 = vadd.xlane.f32.xlu0 %v31_v5 }
  0x1a   :  { %p141_p12 = pnand %p140_p11, %p134_p8 }
  0xa2   :  { %v28_v7 = vpop.xlane.xlu0 %27 }
  0xa3   :  { %v34_v8 = vmul.f32 0.00390625, %v28_v7 }
  0xa5   :  { %v36_v10 = vmul.f32 %v34_v8, %v34_v8  ;;  %v61_v23 = vsel %vm56_vm0, %v34_v8, 0.0 }
  0xa6   :  { %v33_v9 = vpop.xlane.xlu0 %32 }
  0xa7   :  { %v35_v11 = vmul.f32 0.00390625, %v33_v9 }
  0xa9   :  { %v37_v12 = vsub.f32 %v35_v11, %v36_v10 }
  0xab   :  { %v38_v13 = vmax.f32 %v37_v12, 0.0 }
  0xad   :  { %v58_v14 = vadd.f32 1e-05, %v38_v13 }
  0xaf   :  { %109 = vrsqrt.f32 %v58_v14 }
  0xb9   :  { %v110_v20 = vpop.eup %109 }
  0xba   :  { %v60_v21 = vsel %vm56_vm0, %v110_v20, 1.0 }
  0xbb   :  { %v62_v22 = vmul.f32 %v60_v21, %v57_v19 }
  0xbd   :  { %v63_v24 = vmul.f32 %v62_v22, %v61_v23 }
  0xbf   :  { %65 = vrot.lane.b32.xlu1 %v63_v24, %s162_s22 }
  0xc3   :  { %71 = vperm.xlu1 %107, %v62_v22  }
 0x131   :  { %v66_v25 = vpop.permute.xlu1 %65 }
 0x132   :  { %v68_v26 = vsub.f32 %v57_v19, %v66_v25 }
 0x134   :  { %78 = vperm.xlu0 %108, %v68_v26  }
 0x142   :  { %v72_v27 = vpop.permute.xlu1 %71 }
 0x143   :  { %v74_v28 = vmul.f32 %v72_v27, %v24_v0  ;;  %v75_v29 = vmul.f32 %v72_v27, %v25_v1 }
 0x1b3   :  { %v79_v30 = vpop.permute.xlu0 %78 }
 0x1b4   :  { %v81_v31 = vadd.f32 %v79_v30, %v74_v28  ;;  %v82_v32 = vadd.f32 %v79_v30, %v75_v29 }
 0x1b6   :  { %v83_v33 = vmax.f32 %v81_v31, 0.0  ;;  %v84_v34 = vmax.f32 %v82_v32, 0.0 }
 0x1b8   :  { %85 = vst [vmem:[#allocation5] sm:$0xff] %v83_v33  ;;  %86 = vst [vmem:[#allocation5 + $0x8] sm:$0xff] %v84_v34 }
 0x1b9   :  { %144 = shalt.err (!%p141_p12)
}
 0x1ba   :  { %s145_s27 = scalar_lea.hbm %s208_s2, 256 }
 0x1bb   :  { %p146_p13 = scmp.ne.s32.totalorder %s208_s2, %s145_s27  ;;  %p149_p0 = scmp.lt.u32.totalorder %s145_s27, %s208_s2 }
 0x1bd   :  { %p151_p1 = pnand %p149_p0, %p146_p13 }
 0x1bf   :  { %154 = shalt.err (!%p151_p1)
}
 0x1c0   :  { %96 = dma.vmem_to_hbm [thread:$0]  %s94_s24, 256, %s208_s2, [#allocation4]  }
 0x1c1   :  { %157 = dma.done.wait [#allocation4], 256  }
 0x1c2   :  { %158 = vsyncadd [#allocation4], 4294967040 }
 0x1c3   :  { %100 = vsyncpa [#allocation3], 1 }
 0x1c4   :  { %101 = vsyncpa [#allocation4], 1 }

</bundles_post_ra>
